<compile_context>
chip_gen: v5e
topology: v5e:2x2
jax: 0.10.0
libtpu: 0.0.40
codegen_flags: <defaults>
</compile_context>

<pallas_src>
import functools

import jax
import jax.numpy as jnp
import numpy as np
from jax import lax
from jax.experimental import pallas as pl
from jax.experimental.pallas import tpu as pltpu


def _lane_geom(T, W):
    """Front-pad so the T centre rows start at a 128-aligned lane; pad total
    lane extent up to a multiple of 128 (keeps rolls/stores full-vreg)."""
    front = (-W) % 128
    l_eff = front + (T + 2) * W
    l_pad = ((l_eff + 127) // 128) * 128
    return front, l_eff, l_pad


def _vmem_limit_bytes():
    """Generation-aware scoped-VMEM limit (~96 MiB on v5e/v6e, ~48 MiB on v7x)."""
    cap = 64 * 1024 * 1024                      # conservative default (v7x per-core)
    try:
        info = pltpu.get_tpu_info()
        cap = int(getattr(info, "vmem_capacity_bytes", cap)) or cap
    except Exception:
        pass
    return min((3 * cap) // 4, 100 * 1024 * 1024)


def _choose_row_tile(H, W, C, A, dot_bytes, budget):
    """Largest row tile T dividing H whose working set fits `budget` bytes,
    preferring lane-dense tiles (T*W a multiple of 128)."""
    def est(t):
        _, _, l_pad = _lane_geom(t, W)
        return (2 * C * t * W * 4                    # centre input block, x2 buffers
                + 4 * C * W * 4                      # halo rows, x2 arrays x2 buffers
                + C * l_pad * dot_bytes              # staged halo'd tile
                + C * l_pad * 4                      # f32 accumulator scratch
                + C * l_pad * (dot_bytes + 4)        # roll / tap-term temporaries
                + (9 * C * C + 5 * A * C) * dot_bytes + (C + 5 * A) * 4
                + 2 * 5 * A * t * W * 4)             # fused output block, x2 buffers

    divisors = [t for t in range(1, H + 1) if H % t == 0]
    lane_dense = [t for t in divisors if (t * W) % 128 == 0 or t == H]
    for pool in (lane_dense, divisors):              # prefer unmasked lane-dense stores
        fitting = [t for t in pool if est(t) <= budget]
        if fitting:
            return max(fitting)
    # TODO(synk): ragged (non-divisor) row tiles for shapes with no good divisor.
    return min(lane_dense)


def _make_halos(x_nchw, T, n_tiles):
    """(B, n_tiles, C, W) rows just above / below each row tile.  Border tiles
    get zero halos == the conv's zero padding, so no row masking in-kernel."""
    B, C, H, W = x_nchw.shape
    top_rows = jnp.arange(n_tiles) * T - 1
    bot_rows = jnp.arange(n_tiles) * T + T

    def gather(rows):
        g = jnp.take(x_nchw, jnp.clip(rows, 0, H - 1), axis=2)      # (B, C, n, W)
        return jnp.transpose(g, (0, 2, 1, 3))                       # (B, n, C, W)

    halo_top = jnp.where((top_rows >= 0)[None, :, None, None], gather(top_rows), 0.0)
    halo_bot = jnp.where((bot_rows < H)[None, :, None, None], gather(bot_rows), 0.0)
    return halo_top, halo_bot


def _rpn_head_kernel(x_ref, top_ref, bot_ref, wtap_ref, bconv_ref,
                     whead_ref, bhead_ref, out_ref, x_stage, acc_ref, *, T, W):
    # x_ref:     (1, C, T*W)   centre rows of this tile (channels x flat spatial)
    # top_ref:   (1, 1, C, W)  row above the tile (zeros at the image top)
    # bot_ref:   (1, 1, C, W)  row below the tile (zeros at the image bottom)
    # wtap_ref:  (9, C, C)     3x3 conv weights, tap-major (kh*3+kw, cout, cin)
    # bconv_ref: (C, 1)        conv bias
    # whead_ref: (5A, C)       fused cls+box 1x1 weights
    # bhead_ref: (5A, 1)       fused cls+box bias
    # out_ref:   (1, 5A, T*W)  fused output tile (lane-dense store)
    # x_stage:   (C, l_pad)    staged halo'd tile in the MXU dtype (scratch)
    # acc_ref:   (C, l_pad)    f32 conv accumulator (scratch)
    front, l_eff, l_pad = _lane_geom(T, W)
    c0 = front + W                                   # lane offset of first centre elem
    dt = x_stage.dtype
    C = x_stage.shape[0]

    # ---- stage the (T+2)-row halo'd tile once (single cast to the MXU dtype) ----
    if front:
        x_stage[:, 0:front] = jnp.zeros((C, front), dt)
    x_stage[:, front:c0] = top_ref[0, 0].astype(dt)
    x_stage[:, c0:c0 + T * W] = x_ref[0].astype(dt)
    x_stage[:, c0 + T * W:l_eff] = bot_ref[0, 0].astype(dt)
    if l_pad > l_eff:
        x_stage[:, l_eff:l_pad] = jnp.zeros((C, l_pad - l_eff), dt)
    x_t = x_stage[...]                               # (C, l_pad)

    # ---- column-validity masks (left/right zero padding) built in-kernel ----
    col = (lax.broadcasted_iota(jnp.int32, (1, l_pad), 1) + ((-front) % W)) % W
    mask_l = (col >= 1).astype(jnp.float32)          # taps with col offset -1
    mask_r = (col <= W - 2).astype(jnp.float32)      # taps with col offset +1

    # ---- 3x3 conv: 9 lane rolls (XLU) + MXU matmuls into a VMEM accumulator ----
    tap = 0
    for oi in (-1, 0, 1):                            # tap row offset
        for oj in (-1, 0, 1):                        # tap col offset
            s = oi * W + oj                          # flat source offset
            src = x_t if s == 0 else pltpu.roll(x_t, shift=(-s) % l_pad, axis=1)
            term = jnp.dot(wtap_ref[tap], src, preferred_element_type=jnp.float32)
            if oj == -1:                             # post-matmul f32 masking
                term = term * mask_l                 # (native VPU on v5e as well)
            elif oj == 1:
                term = term * mask_r
            if tap == 0:
                acc_ref[...] = term
            else:
                acc_ref[...] += term
            tap += 1

    hidden = jnp.maximum(acc_ref[...] + bconv_ref[...], 0.0)        # (C, l_pad) f32

    # ---- fused cls + box 1x1 heads, then drop the halo/pad lanes ----
    heads = jnp.dot(whead_ref[...], hidden.astype(dt),
                    preferred_element_type=jnp.float32) + bhead_ref[...]
    out_ref[0] = heads[:, c0:c0 + T * W].astype(out_ref.dtype)      # lane-dense


def init_rpn_head_params(key, in_channels, num_anchors):
    """Deterministic init matching nn.init.normal_(std=0.01) / zeros bias."""
    k1, k2, k3 = jax.random.split(key, 3)
    C, A = in_channels, num_anchors
    return {
        "conv_w": 0.01 * jax.random.normal(k1, (C, C, 3, 3), jnp.float32),
        "conv_b": jnp.zeros((C,), jnp.float32),
        "cls_w": 0.01 * jax.random.normal(k2, (A, C, 1, 1), jnp.float32),
        "cls_b": jnp.zeros((A,), jnp.float32),
        "box_w": 0.01 * jax.random.normal(k3, (4 * A, C, 1, 1), jnp.float32),
        "box_b": jnp.zeros((4 * A,), jnp.float32),
    }


def rpn_head_forward(x_nchw, params, *, use_bf16=None, row_tile=None):
    """x_nchw: (B, C, H, W) float32.  Returns (logits, bbox_reg) in NCHW.

    use_bf16: None -> auto (bf16 MXU inputs once C >= 128); True/False to force.
    row_tile: rows per spatial tile (must divide H); None -> auto-sized to VMEM.
    """
    B, C, H, W = x_nchw.shape
    A = params["cls_w"].shape[0]
    HW = H * W

    if use_bf16 is None:
        use_bf16 = C >= 128
    dot_dtype = jnp.bfloat16 if use_bf16 else jnp.float32
    dot_bytes = 2 if use_bf16 else 4

    vmem_limit = _vmem_limit_bytes()
    if row_tile is None:
        T = _choose_row_tile(H, W, C, A, dot_bytes, budget=vmem_limit // 2)
    else:
        T = int(row_tile)
        if H % T:
            raise ValueError(f"row_tile={T} must divide H={H}")
    n_tiles = H // T
    _, _, l_pad = _lane_geom(T, W)

    # ---- glue: free reshape of x, tiny halo-row side arrays, packed weights ----
    x_flat = x_nchw.reshape(B, C, HW)
    halo_top, halo_bot = _make_halos(x_nchw, T, n_tiles)
    w_taps = jnp.transpose(params["conv_w"], (2, 3, 0, 1)).reshape(9, C, C)
    b_conv = params["conv_b"].reshape(C, 1)
    w_heads = jnp.concatenate([params["cls_w"][:, :, 0, 0],
                               params["box_w"][:, :, 0, 0]], axis=0)     # (5A, C)
    b_heads = jnp.concatenate([params["cls_b"],
                               params["box_b"]]).reshape(5 * A, 1)       # (5A, 1)
    if use_bf16:
        w_taps = w_taps.astype(jnp.bfloat16)
        w_heads = w_heads.astype(jnp.bfloat16)

    kernel = functools.partial(_rpn_head_kernel, T=T, W=W)
    const1 = pl.Buffered(1)           # grid-invariant inputs: single VMEM buffer

    fused = pl.pallas_call(
        kernel,
        out_shape=jax.ShapeDtypeStruct((B, 5 * A, HW), jnp.float32),
        grid_spec=pltpu.PrefetchScalarGridSpec(
            num_scalar_prefetch=0,
            grid=(B, n_tiles),
            in_specs=[
                pl.BlockSpec((1, C, T * W), lambda b, r: (b, 0, r)),
                pl.BlockSpec((1, 1, C, W), lambda b, r: (b, r, 0, 0)),
                pl.BlockSpec((1, 1, C, W), lambda b, r: (b, r, 0, 0)),
                pl.BlockSpec((9, C, C), lambda b, r: (0, 0, 0), pipeline_mode=const1),
                pl.BlockSpec((C, 1), lambda b, r: (0, 0), pipeline_mode=const1),
                pl.BlockSpec((5 * A, C), lambda b, r: (0, 0), pipeline_mode=const1),
                pl.BlockSpec((5 * A, 1), lambda b, r: (0, 0), pipeline_mode=const1),
            ],
            out_specs=pl.BlockSpec((1, 5 * A, T * W), lambda b, r: (b, 0, r)),
            scratch_shapes=[pltpu.VMEM((C, l_pad), dot_dtype),
                            pltpu.VMEM((C, l_pad), jnp.float32)]),
        compiler_params=pltpu.CompilerParams(
            dimension_semantics=("parallel", "parallel"),
            vmem_limit_bytes=vmem_limit),
    )(x_flat, halo_top, halo_bot, w_taps, b_conv, w_heads, b_heads)

    # Cheap contiguous split/reshape -- already NCHW, no transposes.
    logits = fused[:, :A, :].reshape(B, A, H, W)
    bbox_reg = fused[:, A:, :].reshape(B, 4 * A, H, W)
    return logits, bbox_reg


def _reference_forward(x_nchw, params):
    """Pure-JAX reference (lax conv in NCHW), used only to validate."""
    dn = lax.conv_dimension_numbers(x_nchw.shape, params["conv_w"].shape,
                                    ("NCHW", "OIHW", "NCHW"))
    h = lax.conv_general_dilated(x_nchw, params["conv_w"], (1, 1), "SAME",
                                 dimension_numbers=dn)
    h = jnp.maximum(h + params["conv_b"][None, :, None, None], 0.0)
    logits = lax.conv_general_dilated(h, params["cls_w"], (1, 1), "VALID",
                                      dimension_numbers=dn)
    logits = logits + params["cls_b"][None, :, None, None]
    bbox = lax.conv_general_dilated(h, params["box_w"], (1, 1), "VALID",
                                    dimension_numbers=dn)
    bbox = bbox + params["box_b"][None, :, None, None]
    return logits, bbox


if __name__ == "__main__":
    key = jax.random.PRNGKey(0)
    k1, k2, k3, k4 = jax.random.split(key, 4)

    # --- f32 path, small shapes, forced 2-way row tiling (exercises the halo). ---
    B, C, H, W, A = 2, 4, 16, 16, 3
    x = jax.random.normal(k1, (B, C, H, W), jnp.float32)
    params = init_rpn_head_params(k2, C, A)
    fwd = jax.jit(functools.partial(rpn_head_forward, use_bf16=False, row_tile=8))
    logits, bbox_reg = fwd(x, params)
    jax.block_until_ready((logits, bbox_reg))
    assert logits.shape == (B, A, H, W)
    assert bbox_reg.shape == (B, 4 * A, H, W)
    ref_logits, ref_bbox = _reference_forward(x, params)
    np.testing.assert_allclose(np.asarray(logits), np.asarray(ref_logits),
                               rtol=1e-5, atol=1e-5)
    np.testing.assert_allclose(np.asarray(bbox_reg), np.asarray(ref_bbox),
                               rtol=1e-5, atol=1e-5)

    # --- bf16 MXU path (C >= 128), H != W, multi-tile with real halos. ---
    B2, C2, H2, W2, A2 = 1, 128, 32, 24, 3
    x2 = jax.random.normal(k3, (B2, C2, H2, W2), jnp.float32)
    params2 = init_rpn_head_params(k4, C2, A2)
    fwd2 = jax.jit(functools.partial(rpn_head_forward, row_tile=16))
    l2, b2 = fwd2(x2, params2)
    jax.block_until_ready((l2, b2))
    rl2, rb2 = _reference_forward(x2, params2)
    np.testing.assert_allclose(np.asarray(l2), np.asarray(rl2), rtol=5e-2, atol=3e-3)
    np.testing.assert_allclose(np.asarray(b2), np.asarray(rb2), rtol=5e-2, atol=3e-3)

    print("KERNEL_OK")
</pallas_src>

<mosaic_0001>
module attributes {stable_mosaic.version = 11 : i64} {
  func.func @_rpn_head_kernel(%arg0: i32, %arg1: i32, %arg2: memref<1x4x128xf32, #tpu.memory_space<vmem>>, %arg3: memref<1x1x4x16xf32, #tpu.memory_space<vmem>>, %arg4: memref<1x1x4x16xf32, #tpu.memory_space<vmem>>, %arg5: memref<9x4x4xf32, #tpu.memory_space<vmem>>, %arg6: memref<4x1xf32, #tpu.memory_space<vmem>>, %arg7: memref<15x4xf32, #tpu.memory_space<vmem>>, %arg8: memref<15x1xf32, #tpu.memory_space<vmem>>, %arg9: memref<1x15x128xf32, #tpu.memory_space<vmem>>, %arg10: memref<4x384xf32, #tpu.memory_space<vmem>>, %arg11: memref<4x384xf32, #tpu.memory_space<vmem>>) attributes {dimension_semantics = [#tpu.dimension_semantics<parallel>, #tpu.dimension_semantics<parallel>], iteration_bounds = array<i64: 2, 2>, scalar_prefetch = 0 : i64, scratch_operands = 2 : i64, tpu.core_type = #tpu.core_type<tc>, window_params = [{transform_indices = @transform_0, window_bounds = array<i64: 1, 4, 128>}, {transform_indices = @transform_1, window_bounds = array<i64: 1, 1, 4, 16>}, {transform_indices = @transform_2, window_bounds = array<i64: 1, 1, 4, 16>}, {pipeline_mode = #tpu.pipeline_mode<synchronous>, transform_indices = @transform_3, window_bounds = array<i64: 9, 4, 4>}, {pipeline_mode = #tpu.pipeline_mode<synchronous>, transform_indices = @transform_4, window_bounds = array<i64: 4, 1>}, {pipeline_mode = #tpu.pipeline_mode<synchronous>, transform_indices = @transform_5, window_bounds = array<i64: 15, 4>}, {pipeline_mode = #tpu.pipeline_mode<synchronous>, transform_indices = @transform_6, window_bounds = array<i64: 15, 1>}, {transform_indices = @transform_7, window_bounds = array<i64: 1, 15, 128>}]} {
    %cst = arith.constant 0.000000e+00 : f32
    %0 = vector.broadcast %cst : f32 to vector<4x112xf32>
    %c0 = arith.constant 0 : index
    %c0_0 = arith.constant 0 : index
    %1 = vector.load %arg10[%c0, %c0_0] : memref<4x384xf32, #tpu.memory_space<vmem>>, vector<4x112xf32>
    tpu.vector_store %arg10[%c0, %c0_0], %0 {strides = array<i32>} : memref<4x384xf32, #tpu.memory_space<vmem>>, vector<4x112xf32>,
    %c0_1 = arith.constant 0 : index
    %c0_2 = arith.constant 0 : index
    %c0_3 = arith.constant 0 : index
    %c0_4 = arith.constant 0 : index
    %2 = vector.load %arg3[%c0_1, %c0_2, %c0_3, %c0_4] : memref<1x1x4x16xf32, #tpu.memory_space<vmem>>, vector<1x1x4x16xf32>
    %3 = vector.shape_cast %2 : vector<1x1x4x16xf32> to vector<4x16xf32>
    %c0_5 = arith.constant 0 : index
    %c112 = arith.constant 112 : index
    %4 = vector.load %arg10[%c0_5, %c112] : memref<4x384xf32, #tpu.memory_space<vmem>>, vector<4x16xf32>
    tpu.vector_store %arg10[%c0_5, %c112], %3 {strides = array<i32>} : memref<4x384xf32, #tpu.memory_space<vmem>>, vector<4x16xf32>,
    %c0_6 = arith.constant 0 : index
    %c0_7 = arith.constant 0 : index
    %c0_8 = arith.constant 0 : index
    %5 = vector.load %arg2[%c0_6, %c0_7, %c0_8] : memref<1x4x128xf32, #tpu.memory_space<vmem>>, vector<1x4x128xf32>
    %6 = vector.shape_cast %5 : vector<1x4x128xf32> to vector<4x128xf32>
    %c0_9 = arith.constant 0 : index
    %c128 = arith.constant 128 : index
    %7 = vector.load %arg10[%c0_9, %c128] : memref<4x384xf32, #tpu.memory_space<vmem>>, vector<4x128xf32>
    tpu.vector_store %arg10[%c0_9, %c128], %6 {strides = array<i32>} : memref<4x384xf32, #tpu.memory_space<vmem>>, vector<4x128xf32>,
    %c0_10 = arith.constant 0 : index
    %c0_11 = arith.constant 0 : index
    %c0_12 = arith.constant 0 : index
    %c0_13 = arith.constant 0 : index
    %8 = vector.load %arg4[%c0_10, %c0_11, %c0_12, %c0_13] : memref<1x1x4x16xf32, #tpu.memory_space<vmem>>, vector<1x1x4x16xf32>
    %9 = vector.shape_cast %8 : vector<1x1x4x16xf32> to vector<4x16xf32>
    %c0_14 = arith.constant 0 : index
    %c256 = arith.constant 256 : index
    %10 = vector.load %arg10[%c0_14, %c256] : memref<4x384xf32, #tpu.memory_space<vmem>>, vector<4x16xf32>
    tpu.vector_store %arg10[%c0_14, %c256], %9 {strides = array<i32>} : memref<4x384xf32, #tpu.memory_space<vmem>>, vector<4x16xf32>,
    %cst_15 = arith.constant 0.000000e+00 : f32
    %11 = vector.broadcast %cst_15 : f32 to vector<4x112xf32>
    %c0_16 = arith.constant 0 : index
    %c272 = arith.constant 272 : index
    %12 = vector.load %arg10[%c0_16, %c272] : memref<4x384xf32, #tpu.memory_space<vmem>>, vector<4x112xf32>
    tpu.vector_store %arg10[%c0_16, %c272], %11 {strides = array<i32>} : memref<4x384xf32, #tpu.memory_space<vmem>>, vector<4x112xf32>,
    %c0_17 = arith.constant 0 : index
    %c0_18 = arith.constant 0 : index
    %13 = vector.load %arg10[%c0_17, %c0_18] : memref<4x384xf32, #tpu.memory_space<vmem>>, vector<4x384xf32>
    %14 = tpu.iota {dimensions = array<i32: 1>} : vector<1x384xi32>
    %c0_i32 = arith.constant 0 : i32
    %15 = vector.broadcast %c0_i32 : i32 to vector<1x384xi32>
    %16 = arith.addi %14, %15 : vector<1x384xi32>
    %c16_i32 = arith.constant 16 : i32
    %c0_i32_19 = arith.constant 0 : i32
    %17 = arith.cmpi eq, %c16_i32, %c0_i32_19 : i32
    %c1_i32 = arith.constant 1 : i32
    %18 = arith.select %17, %c1_i32, %c16_i32 : i32
    %19 = vector.broadcast %18 : i32 to vector<1x384xi32>
    %20 = arith.remsi %16, %19 : vector<1x384xi32>
    %c0_i32_20 = arith.constant 0 : i32
    %21 = vector.broadcast %c0_i32_20 : i32 to vector<1x384xi32>
    %22 = arith.cmpi ne, %20, %21 : vector<1x384xi32>
    %c0_i32_21 = arith.constant 0 : i32
    %23 = vector.broadcast %c0_i32_21 : i32 to vector<1x384xi32>
    %24 = arith.cmpi slt, %20, %23 : vector<1x384xi32>
    %c0_i32_22 = arith.constant 0 : i32
    %25 = arith.cmpi slt, %18, %c0_i32_22 : i32
    %26 = vector.broadcast %25 : i1 to vector<1x384xi1>
    %27 = vector.broadcast %26 : vector<1x384xi1> to vector<1x384xi1>
    %28 = arith.xori %24, %27 : vector<1x384xi1>
    %29 = arith.andi %28, %22 : vector<1x384xi1>
    %30 = vector.broadcast %18 : i32 to vector<1x384xi32>
    %31 = arith.addi %20, %30 : vector<1x384xi32>
    %32 = arith.select %29, %31, %20 : vector<1x384xi1>, vector<1x384xi32>
    %c1_i32_23 = arith.constant 1 : i32
    %33 = vector.broadcast %c1_i32_23 : i32 to vector<1x384xi32>
    %34 = arith.cmpi sge, %32, %33 : vector<1x384xi32>
    %35 = arith.extui %34 : vector<1x384xi1> to vector<1x384xi32>
    %36 = arith.sitofp %35 : vector<1x384xi32> to vector<1x384xf32>
    %c14_i32 = arith.constant 14 : i32
    %37 = vector.broadcast %c14_i32 : i32 to vector<1x384xi32>
    %38 = arith.cmpi sle, %32, %37 : vector<1x384xi32>
    %39 = arith.extui %38 : vector<1x384xi1> to vector<1x384xi32>
    %40 = arith.sitofp %39 : vector<1x384xi32> to vector<1x384xf32>
    %c17_i32 = arith.constant 17 : i32
    %41 = tpu.dynamic_rotate %13 by %c17_i32 dim 1 : vector<4x384xf32>, i32 -> vector<4x384xf32>
    %c0_24 = arith.constant 0 : index
    %c0_25 = arith.constant 0 : index
    %c0_26 = arith.constant 0 : index
    %42 = vector.load %arg5[%c0_24, %c0_25, %c0_26] : memref<9x4x4xf32, #tpu.memory_space<vmem>>, vector<1x4x4xf32>
    %43 = vector.shape_cast %42 : vector<1x4x4xf32> to vector<4x4xf32>
    %cst_27 = arith.constant dense<0.000000e+00> : vector<4x384xf32>
    %44 = tpu.matmul %43, %41, %cst_27 {dimension_numbers = #tpu.dot_dimension_numbers<[1], [0], [0], [1], [0, 0, 1, 1], [], []>} : vector<4x4xf32>, vector<4x384xf32>, vector<4x384xf32> -> vector<4x384xf32>
    %45 = vector.broadcast %36 : vector<1x384xf32> to vector<4x384xf32>
    %46 = arith.mulf %44, %45 : vector<4x384xf32>
    %c0_28 = arith.constant 0 : index
    %c0_29 = arith.constant 0 : index
    %47 = vector.load %arg11[%c0_28, %c0_29] : memref<4x384xf32, #tpu.memory_space<vmem>>, vector<4x384xf32>
    tpu.vector_store %arg11[%c0_28, %c0_29], %46 {strides = array<i32>} : memref<4x384xf32, #tpu.memory_space<vmem>>, vector<4x384xf32>,
    %c16_i32_30 = arith.constant 16 : i32
    %48 = tpu.dynamic_rotate %13 by %c16_i32_30 dim 1 : vector<4x384xf32>, i32 -> vector<4x384xf32>
    %c1 = arith.constant 1 : index
    %c0_31 = arith.constant 0 : index
    %c0_32 = arith.constant 0 : index
    %49 = vector.load %arg5[%c1, %c0_31, %c0_32] : memref<9x4x4xf32, #tpu.memory_space<vmem>>, vector<1x4x4xf32>
    %50 = vector.shape_cast %49 : vector<1x4x4xf32> to vector<4x4xf32>
    %cst_33 = arith.constant dense<0.000000e+00> : vector<4x384xf32>
    %51 = tpu.matmul %50, %48, %cst_33 {dimension_numbers = #tpu.dot_dimension_numbers<[1], [0], [0], [1], [0, 0, 1, 1], [], []>} : vector<4x4xf32>, vector<4x384xf32>, vector<4x384xf32> -> vector<4x384xf32>
    %c0_34 = arith.constant 0 : index
    %c0_35 = arith.constant 0 : index
    %52 = vector.load %arg11[%c0_34, %c0_35] : memref<4x384xf32, #tpu.memory_space<vmem>>, vector<4x384xf32>
    %53 = arith.addf %52, %51 : vector<4x384xf32>
    %c0_36 = arith.constant 0 : index
    %c0_37 = arith.constant 0 : index
    %54 = vector.load %arg11[%c0_36, %c0_37] : memref<4x384xf32, #tpu.memory_space<vmem>>, vector<4x384xf32>
    tpu.vector_store %arg11[%c0_36, %c0_37], %53 {strides = array<i32>} : memref<4x384xf32, #tpu.memory_space<vmem>>, vector<4x384xf32>,
    %c15_i32 = arith.constant 15 : i32
    %55 = tpu.dynamic_rotate %13 by %c15_i32 dim 1 : vector<4x384xf32>, i32 -> vector<4x384xf32>
    %c2 = arith.constant 2 : index
    %c0_38 = arith.constant 0 : index
    %c0_39 = arith.constant 0 : index
    %56 = vector.load %arg5[%c2, %c0_38, %c0_39] : memref<9x4x4xf32, #tpu.memory_space<vmem>>, vector<1x4x4xf32>
    %57 = vector.shape_cast %56 : vector<1x4x4xf32> to vector<4x4xf32>
    %cst_40 = arith.constant dense<0.000000e+00> : vector<4x384xf32>
    %58 = tpu.matmul %57, %55, %cst_40 {dimension_numbers = #tpu.dot_dimension_numbers<[1], [0], [0], [1], [0, 0, 1, 1], [], []>} : vector<4x4xf32>, vector<4x384xf32>, vector<4x384xf32> -> vector<4x384xf32>
    %59 = vector.broadcast %40 : vector<1x384xf32> to vector<4x384xf32>
    %60 = arith.mulf %58, %59 : vector<4x384xf32>
    %c0_41 = arith.constant 0 : index
    %c0_42 = arith.constant 0 : index
    %61 = vector.load %arg11[%c0_41, %c0_42] : memref<4x384xf32, #tpu.memory_space<vmem>>, vector<4x384xf32>
    %62 = arith.addf %61, %60 : vector<4x384xf32>
    %c0_43 = arith.constant 0 : index
    %c0_44 = arith.constant 0 : index
    %63 = vector.load %arg11[%c0_43, %c0_44] : memref<4x384xf32, #tpu.memory_space<vmem>>, vector<4x384xf32>
    tpu.vector_store %arg11[%c0_43, %c0_44], %62 {strides = array<i32>} : memref<4x384xf32, #tpu.memory_space<vmem>>, vector<4x384xf32>,
    %c1_i32_45 = arith.constant 1 : i32
    %64 = tpu.dynamic_rotate %13 by %c1_i32_45 dim 1 : vector<4x384xf32>, i32 -> vector<4x384xf32>
    %c3 = arith.constant 3 : index
    %c0_46 = arith.constant 0 : index
    %c0_47 = arith.constant 0 : index
    %65 = vector.load %arg5[%c3, %c0_46, %c0_47] : memref<9x4x4xf32, #tpu.memory_space<vmem>>, vector<1x4x4xf32>
    %66 = vector.shape_cast %65 : vector<1x4x4xf32> to vector<4x4xf32>
    %cst_48 = arith.constant dense<0.000000e+00> : vector<4x384xf32>
    %67 = tpu.matmul %66, %64, %cst_48 {dimension_numbers = #tpu.dot_dimension_numbers<[1], [0], [0], [1], [0, 0, 1, 1], [], []>} : vector<4x4xf32>, vector<4x384xf32>, vector<4x384xf32> -> vector<4x384xf32>
    %68 = vector.broadcast %36 : vector<1x384xf32> to vector<4x384xf32>
    %69 = arith.mulf %67, %68 : vector<4x384xf32>
    %c0_49 = arith.constant 0 : index
    %c0_50 = arith.constant 0 : index
    %70 = vector.load %arg11[%c0_49, %c0_50] : memref<4x384xf32, #tpu.memory_space<vmem>>, vector<4x384xf32>
    %71 = arith.addf %70, %69 : vector<4x384xf32>
    %c0_51 = arith.constant 0 : index
    %c0_52 = arith.constant 0 : index
    %72 = vector.load %arg11[%c0_51, %c0_52] : memref<4x384xf32, #tpu.memory_space<vmem>>, vector<4x384xf32>
    tpu.vector_store %arg11[%c0_51, %c0_52], %71 {strides = array<i32>} : memref<4x384xf32, #tpu.memory_space<vmem>>, vector<4x384xf32>,
    %c4 = arith.constant 4 : index
    %c0_53 = arith.constant 0 : index
    %c0_54 = arith.constant 0 : index
    %73 = vector.load %arg5[%c4, %c0_53, %c0_54] : memref<9x4x4xf32, #tpu.memory_space<vmem>>, vector<1x4x4xf32>
    %74 = vector.shape_cast %73 : vector<1x4x4xf32> to vector<4x4xf32>
    %cst_55 = arith.constant dense<0.000000e+00> : vector<4x384xf32>
    %75 = tpu.matmul %74, %13, %cst_55 {dimension_numbers = #tpu.dot_dimension_numbers<[1], [0], [0], [1], [0, 0, 1, 1], [], []>} : vector<4x4xf32>, vector<4x384xf32>, vector<4x384xf32> -> vector<4x384xf32>
    %c0_56 = arith.constant 0 : index
    %c0_57 = arith.constant 0 : index
    %76 = vector.load %arg11[%c0_56, %c0_57] : memref<4x384xf32, #tpu.memory_space<vmem>>, vector<4x384xf32>
    %77 = arith.addf %76, %75 : vector<4x384xf32>
    %c0_58 = arith.constant 0 : index
    %c0_59 = arith.constant 0 : index
    %78 = vector.load %arg11[%c0_58, %c0_59] : memref<4x384xf32, #tpu.memory_space<vmem>>, vector<4x384xf32>
    tpu.vector_store %arg11[%c0_58, %c0_59], %77 {strides = array<i32>} : memref<4x384xf32, #tpu.memory_space<vmem>>, vector<4x384xf32>,
    %c383_i32 = arith.constant 383 : i32
    %79 = tpu.dynamic_rotate %13 by %c383_i32 dim 1 : vector<4x384xf32>, i32 -> vector<4x384xf32>
    %c5 = arith.constant 5 : index
    %c0_60 = arith.constant 0 : index
    %c0_61 = arith.constant 0 : index
    %80 = vector.load %arg5[%c5, %c0_60, %c0_61] : memref<9x4x4xf32, #tpu.memory_space<vmem>>, vector<1x4x4xf32>
    %81 = vector.shape_cast %80 : vector<1x4x4xf32> to vector<4x4xf32>
    %cst_62 = arith.constant dense<0.000000e+00> : vector<4x384xf32>
    %82 = tpu.matmul %81, %79, %cst_62 {dimension_numbers = #tpu.dot_dimension_numbers<[1], [0], [0], [1], [0, 0, 1, 1], [], []>} : vector<4x4xf32>, vector<4x384xf32>, vector<4x384xf32> -> vector<4x384xf32>
    %83 = vector.broadcast %40 : vector<1x384xf32> to vector<4x384xf32>
    %84 = arith.mulf %82, %83 : vector<4x384xf32>
    %c0_63 = arith.constant 0 : index
    %c0_64 = arith.constant 0 : index
    %85 = vector.load %arg11[%c0_63, %c0_64] : memref<4x384xf32, #tpu.memory_space<vmem>>, vector<4x384xf32>
    %86 = arith.addf %85, %84 : vector<4x384xf32>
    %c0_65 = arith.constant 0 : index
    %c0_66 = arith.constant 0 : index
    %87 = vector.load %arg11[%c0_65, %c0_66] : memref<4x384xf32, #tpu.memory_space<vmem>>, vector<4x384xf32>
    tpu.vector_store %arg11[%c0_65, %c0_66], %86 {strides = array<i32>} : memref<4x384xf32, #tpu.memory_space<vmem>>, vector<4x384xf32>,
    %c369_i32 = arith.constant 369 : i32
    %88 = tpu.dynamic_rotate %13 by %c369_i32 dim 1 : vector<4x384xf32>, i32 -> vector<4x384xf32>
    %c6 = arith.constant 6 : index
    %c0_67 = arith.constant 0 : index
    %c0_68 = arith.constant 0 : index
    %89 = vector.load %arg5[%c6, %c0_67, %c0_68] : memref<9x4x4xf32, #tpu.memory_space<vmem>>, vector<1x4x4xf32>
    %90 = vector.shape_cast %89 : vector<1x4x4xf32> to vector<4x4xf32>
    %cst_69 = arith.constant dense<0.000000e+00> : vector<4x384xf32>
    %91 = tpu.matmul %90, %88, %cst_69 {dimension_numbers = #tpu.dot_dimension_numbers<[1], [0], [0], [1], [0, 0, 1, 1], [], []>} : vector<4x4xf32>, vector<4x384xf32>, vector<4x384xf32> -> vector<4x384xf32>
    %92 = vector.broadcast %36 : vector<1x384xf32> to vector<4x384xf32>
    %93 = arith.mulf %91, %92 : vector<4x384xf32>
    %c0_70 = arith.constant 0 : index
    %c0_71 = arith.constant 0 : index
    %94 = vector.load %arg11[%c0_70, %c0_71] : memref<4x384xf32, #tpu.memory_space<vmem>>, vector<4x384xf32>
    %95 = arith.addf %94, %93 : vector<4x384xf32>
    %c0_72 = arith.constant 0 : index
    %c0_73 = arith.constant 0 : index
    %96 = vector.load %arg11[%c0_72, %c0_73] : memref<4x384xf32, #tpu.memory_space<vmem>>, vector<4x384xf32>
    tpu.vector_store %arg11[%c0_72, %c0_73], %95 {strides = array<i32>} : memref<4x384xf32, #tpu.memory_space<vmem>>, vector<4x384xf32>,
    %c368_i32 = arith.constant 368 : i32
    %97 = tpu.dynamic_rotate %13 by %c368_i32 dim 1 : vector<4x384xf32>, i32 -> vector<4x384xf32>
    %c7 = arith.constant 7 : index
    %c0_74 = arith.constant 0 : index
    %c0_75 = arith.constant 0 : index
    %98 = vector.load %arg5[%c7, %c0_74, %c0_75] : memref<9x4x4xf32, #tpu.memory_space<vmem>>, vector<1x4x4xf32>
    %99 = vector.shape_cast %98 : vector<1x4x4xf32> to vector<4x4xf32>
    %cst_76 = arith.constant dense<0.000000e+00> : vector<4x384xf32>
    %100 = tpu.matmul %99, %97, %cst_76 {dimension_numbers = #tpu.dot_dimension_numbers<[1], [0], [0], [1], [0, 0, 1, 1], [], []>} : vector<4x4xf32>, vector<4x384xf32>, vector<4x384xf32> -> vector<4x384xf32>
    %c0_77 = arith.constant 0 : index
    %c0_78 = arith.constant 0 : index
    %101 = vector.load %arg11[%c0_77, %c0_78] : memref<4x384xf32, #tpu.memory_space<vmem>>, vector<4x384xf32>
    %102 = arith.addf %101, %100 : vector<4x384xf32>
    %c0_79 = arith.constant 0 : index
    %c0_80 = arith.constant 0 : index
    %103 = vector.load %arg11[%c0_79, %c0_80] : memref<4x384xf32, #tpu.memory_space<vmem>>, vector<4x384xf32>
    tpu.vector_store %arg11[%c0_79, %c0_80], %102 {strides = array<i32>} : memref<4x384xf32, #tpu.memory_space<vmem>>, vector<4x384xf32>,
    %c367_i32 = arith.constant 367 : i32
    %104 = tpu.dynamic_rotate %13 by %c367_i32 dim 1 : vector<4x384xf32>, i32 -> vector<4x384xf32>
    %c8 = arith.constant 8 : index
    %c0_81 = arith.constant 0 : index
    %c0_82 = arith.constant 0 : index
    %105 = vector.load %arg5[%c8, %c0_81, %c0_82] : memref<9x4x4xf32, #tpu.memory_space<vmem>>, vector<1x4x4xf32>
    %106 = vector.shape_cast %105 : vector<1x4x4xf32> to vector<4x4xf32>
    %cst_83 = arith.constant dense<0.000000e+00> : vector<4x384xf32>
    %107 = tpu.matmul %106, %104, %cst_83 {dimension_numbers = #tpu.dot_dimension_numbers<[1], [0], [0], [1], [0, 0, 1, 1], [], []>} : vector<4x4xf32>, vector<4x384xf32>, vector<4x384xf32> -> vector<4x384xf32>
    %108 = vector.broadcast %40 : vector<1x384xf32> to vector<4x384xf32>
    %109 = arith.mulf %107, %108 : vector<4x384xf32>
    %c0_84 = arith.constant 0 : index
    %c0_85 = arith.constant 0 : index
    %110 = vector.load %arg11[%c0_84, %c0_85] : memref<4x384xf32, #tpu.memory_space<vmem>>, vector<4x384xf32>
    %111 = arith.addf %110, %109 : vector<4x384xf32>
    %c0_86 = arith.constant 0 : index
    %c0_87 = arith.constant 0 : index
    %112 = vector.load %arg11[%c0_86, %c0_87] : memref<4x384xf32, #tpu.memory_space<vmem>>, vector<4x384xf32>
    tpu.vector_store %arg11[%c0_86, %c0_87], %111 {strides = array<i32>} : memref<4x384xf32, #tpu.memory_space<vmem>>, vector<4x384xf32>,
    %c0_88 = arith.constant 0 : index
    %c0_89 = arith.constant 0 : index
    %113 = vector.load %arg11[%c0_88, %c0_89] : memref<4x384xf32, #tpu.memory_space<vmem>>, vector<4x384xf32>
    %c0_90 = arith.constant 0 : index
    %c0_91 = arith.constant 0 : index
    %114 = vector.load %arg6[%c0_90, %c0_91] : memref<4x1xf32, #tpu.memory_space<vmem>>, vector<4x1xf32>
    %115 = vector.broadcast %114 : vector<4x1xf32> to vector<4x384xf32>
    %116 = arith.addf %113, %115 : vector<4x384xf32>
    %cst_92 = arith.constant 0.000000e+00 : f32
    %117 = vector.broadcast %cst_92 : f32 to vector<4x384xf32>
    %118 = arith.maximumf %116, %117 : vector<4x384xf32>
    %c0_93 = arith.constant 0 : index
    %c0_94 = arith.constant 0 : index
    %119 = vector.load %arg7[%c0_93, %c0_94] : memref<15x4xf32, #tpu.memory_space<vmem>>, vector<15x4xf32>
    %cst_95 = arith.constant dense<0.000000e+00> : vector<15x384xf32>
    %120 = tpu.matmul %119, %118, %cst_95 {dimension_numbers = #tpu.dot_dimension_numbers<[1], [0], [0], [1], [0, 0, 1, 1], [], []>} : vector<15x4xf32>, vector<4x384xf32>, vector<15x384xf32> -> vector<15x384xf32>
    %c0_96 = arith.constant 0 : index
    %c0_97 = arith.constant 0 : index
    %121 = vector.load %arg8[%c0_96, %c0_97] : memref<15x1xf32, #tpu.memory_space<vmem>>, vector<15x1xf32>
    %122 = vector.broadcast %121 : vector<15x1xf32> to vector<15x384xf32>
    %123 = arith.addf %120, %122 : vector<15x384xf32>
    %124 = vector.extract_strided_slice %123 {offsets = [0, 128], sizes = [15, 128], strides = [1, 1]} : vector<15x384xf32> to vector<15x128xf32>
    %c0_98 = arith.constant 0 : index
    %c0_99 = arith.constant 0 : index
    %c0_100 = arith.constant 0 : index
    %125 = vector.load %arg9[%c0_98, %c0_99, %c0_100] : memref<1x15x128xf32, #tpu.memory_space<vmem>>, vector<1x15x128xf32>
    %126 = vector.shape_cast %125 : vector<1x15x128xf32> to vector<15x128xf32>
    %127 = vector.shape_cast %124 : vector<15x128xf32> to vector<1x15x128xf32>
    tpu.vector_store %arg9[%c0_98, %c0_99, %c0_100], %127 {strides = array<i32>} : memref<1x15x128xf32, #tpu.memory_space<vmem>>, vector<1x15x128xf32>,
    return
  }
  func.func @transform_0(%arg0: i32, %arg1: i32) -> (i32, i32, i32) {
    %c0_i32 = arith.constant 0 : i32
    %c0_i32_0 = arith.constant 0 : i32
    return %arg0, %c0_i32, %arg1 : i32, i32, i32
  }
  func.func @transform_1(%arg0: i32, %arg1: i32) -> (i32, i32, i32, i32) {
    %c0_i32 = arith.constant 0 : i32
    %c0_i32_0 = arith.constant 0 : i32
    %c0_i32_1 = arith.constant 0 : i32
    return %arg0, %arg1, %c0_i32, %c0_i32_0 : i32, i32, i32, i32
  }
  func.func @transform_2(%arg0: i32, %arg1: i32) -> (i32, i32, i32, i32) {
    %c0_i32 = arith.constant 0 : i32
    %c0_i32_0 = arith.constant 0 : i32
    %c0_i32_1 = arith.constant 0 : i32
    return %arg0, %arg1, %c0_i32, %c0_i32_0 : i32, i32, i32, i32
  }
  func.func @transform_3(%arg0: i32, %arg1: i32) -> (i32, i32, i32) {
    %c0_i32 = arith.constant 0 : i32
    %c0_i32_0 = arith.constant 0 : i32
    %c0_i32_1 = arith.constant 0 : i32
    %c0_i32_2 = arith.constant 0 : i32
    return %c0_i32, %c0_i32_0, %c0_i32_1 : i32, i32, i32
  }
  func.func @transform_4(%arg0: i32, %arg1: i32) -> (i32, i32) {
    %c0_i32 = arith.constant 0 : i32
    %c0_i32_0 = arith.constant 0 : i32
    %c0_i32_1 = arith.constant 0 : i32
    return %c0_i32, %c0_i32_0 : i32, i32
  }
  func.func @transform_5(%arg0: i32, %arg1: i32) -> (i32, i32) {
    %c0_i32 = arith.constant 0 : i32
    %c0_i32_0 = arith.constant 0 : i32
    %c0_i32_1 = arith.constant 0 : i32
    return %c0_i32, %c0_i32_0 : i32, i32
  }
  func.func @transform_6(%arg0: i32, %arg1: i32) -> (i32, i32) {
    %c0_i32 = arith.constant 0 : i32
    %c0_i32_0 = arith.constant 0 : i32
    %c0_i32_1 = arith.constant 0 : i32
    return %c0_i32, %c0_i32_0 : i32, i32
  }
  func.func @transform_7(%arg0: i32, %arg1: i32) -> (i32, i32, i32) {
    %c0_i32 = arith.constant 0 : i32
    %c0_i32_0 = arith.constant 0 : i32
    return %arg0, %c0_i32, %arg1 : i32, i32, i32
  }
}

</mosaic_0001>

<bundles_post_ra>
// kernel: rpn_head_forward.1
= control target key start
LH: loop header
LB: loop body
LE: loop exit
PB: predicated region body
PF: predicated region fallthrough
CT: control target
= control target key end

     0   :  { %s1861_s24 = smov 0   ;;  %s1863_s25 = smov 0   ;;  %s2126_s0 = inlined_call_operand.vmem [shape: f32[2,4,256], index: 0, kind: input, shape index: {}]   ;;  %s2127_s1 = inlined_call_operand.vmem [shape: f32[2,2,4,16], index: 1, kind: input, shape index: {}]   ;;  %s2128_s2 = inlined_call_operand.vmem [shape: f32[2,2,4,16], index: 2, kind: input, shape index: {}]   ;;  %s2129_s3 = inlined_call_operand.vmem [shape: f32[9,4,4], index: 3, kind: input, shape index: {}]   ;;  %s2130_s4 = inlined_call_operand.vmem [shape: f32[4,1], index: 4, kind: input, shape index: {}]   ;;  %s2131_s5 = inlined_call_operand.vmem [shape: f32[15,4], index: 5, kind: input, shape index: {}]   ;;  %s2132_s6 = inlined_call_operand.vmem [shape: f32[15,1], index: 6, kind: input, shape index: {}]   ;;  %s2133_s7 = inlined_call_operand.vmem [shape: f32[2,15,256], index: 7, kind: output, shape index: {}]  }
   0x1   :  { %s1865_s26 = smov 0   ;;  %s1867_s27 = smov 0  }
   0x2   :  { %s1869_s28 = smov 0   ;;  %s1871_s29 = smov 0  }
   0x3   :  { %s1873_s30 = smov 0  }
   0x4 LB: > { %s26_s8 = sadd.s32 1, %s1800_s28  ;;  %s29_s9 = sadd.s32 1, %s1804_s29  ;;  %s1808_s30 = sphi %s1873_s30, %s17_s30   ;;  %s1804_s29 = sphi %s1871_s29, %s2146_s29   ;;  %s1800_s28 = sphi %s1869_s28, %s2145_s28   ;;  %s1796_s27 = sphi %s1867_s27, %s2144_s27   ;;  %s1792_s26 = sphi %s1865_s26, %s2143_s26   ;;  %s1788_s25 = sphi %s1863_s25, %s2142_s25   ;;  %s1784_s24 = sphi %s1861_s24, %s2141_s24  }
   0x5   : > { %p27_p0 = scmp.ge.s32.totalorder %s26_s8, 2  ;;  %s1596_s10 = sadd.s32 4294967295, %s1808_s30  }
   0x6   : > { %p216_p1 = scmp.ne.s32.totalorder %s1788_s25, %s1784_s24  ;;  %p217_p2 = scmp.eq.s32.totalorder %s1596_s10, 3 }
   0x7   : > { %s2148_s8 = smov (%p27_p0, %s26_s8), 0  ;;  %s2150_s9 = smov (!%p27_p0, %s29_s9), %s1804_s29 }
   0x8   : > { %2136 = sst [smem:[#allocation5_spill]] %s2148_s8  ;;  %s202_s11 = ssub.s32 %s1800_s28, %s2148_s8 }
   0x9   : > { %p31_p3 = scmp.ge.s32.totalorder %s2150_s9, 2  ;;  %p1600_p4 = scmp.ge.s32.totalorder %s1808_s30, 1 }
   0xa   : > { %p1907_p5 = por %p217_p2, %p216_p1  ;;  %p286_p6 = scmp.lt.s32.totalorder %s1808_s30, 5 }
   0xb   : > { %s2152_s9 = smov (%p31_p3, %s2150_s9), 0  ;;  %s206_s15 = sadd.s32 1, %s1788_s25 }
   0xc   : > { %2138 = sst [smem:[#allocation6_spill]] %s2152_s9  ;;  %p287_p7 = pnand %p1600_p4, %p286_p6 }
   0xd   : > { %s201_s13 = ssub.s32 %s1804_s29, %s2152_s9  ;;  %p336_p9 = scmp.lt.s32.totalorder (!%p287_p7), %s1796_s27, 1 }
   0xe   : > { %s203_s14 = sor.u32 %s202_s11, %s201_s13  ;;  %290 = sbr.rel (%p287_p7) target bundleno = 635 (0x27b), region = 48 }
   0xf   : > { %p204_p8 = scmp.eq.s32.totalorder %s203_s14, 0  ;;  %p338_p10 = scmp.lt.s32.totalorder (!%p287_p7), %s1792_s26, 1 }
  0x10   : > { %s1814_s9 = smov (!%p287_p7), 15   ;;  %s1818_s22 = smov (!%p287_p7), 111  }
  0x11   : > { %s1918_s16 = scalar_select %p204_p8, %s1788_s25, %s206_s15  }
  0x12   : > { %s333_s23 = sand.u32 (!%p287_p7), 1, %s1784_s24  }
  0x13   : > { %vm360_vm0 = vcmask 912384   ;;  %v1810_v0 = vmov 0.0   ;;  %s337_s17 = scalar_select %p336_p9, %s1796_s27, 1  ;;  %vm372_vm1 = vcmask 125952   ;;  %vm374_vm2 = vcmask 1043584  }
  0x14   : > { %361 = vst.msk [vmem:[#allocation2] sm:$0xf] %vm360_vm0, %v1810_v0  ;;  %s339_s18 = scalar_select %p338_p10, %s1792_s26, 1  ;;  %vm367_vm3 = vcmask 1044352   ;;  %v378_v35 = vlaneseq  ;;  %vm462_vm5 = vcmask 1043456   ;;  %vm458_vm6 = vcmask 31744  }
  0x15   : > { %s1602_s19 = sshll.u32 %s337_s17, 1  ;;  %s1811_s17 = smov 112   ;;  %v1620_v38 = vld [vmem:[%s2129_s3 + $0x4] sm:$0xf]  ;;  %v457_v43 = vld [vmem:[%s2129_s3] sm:$0xf] }
  0x16   : > { %s341_s20 = sadd.s32 %s1602_s19, %s339_s18  ;;  %s1812_s18 = smov 16   ;;  %v1945_v36 = vand.u32 127, %v378_v35  ;;  %v1627_v53 = vld [vmem:[%s2129_s3 + $0x8] sm:$0xf]  ;;  %v1634_v63 = vld [vmem:[%s2129_s3 + $0xc] sm:$0xf] }
  0x17   : > { %s1603_s21 = sshll.u32 %s341_s20, 2  ;;  %s1815_s19 = smov 1  }
  0x18   : > { %s351_s10 = scalar_lea.vmem %s2127_s1, %s1603_s21  ;;  %s359_s14 = scalar_lea.vmem %s2128_s2, %s1603_s21  ;;  %vm557_vm4 = vcmp.lt.s32.totalorder %v1945_v36, 16  ;;  %vm453_vm7 = vcmp.lt.s32.totalorder %v1945_v36, 17  ;;  %vm661_vm8 = vcmp.lt.s32.totalorder %v1945_v36, 15  ;;  %vm768_vm9 = vcmp.lt.s32.totalorder %v1945_v36, 1 }
  0x19   : > { %v362_v1 = vld [vmem:[%s351_s10] sm:$0xf]  ;;  %s343_s8 = scalar_lea.vmem %s2126_s0, %s1603_s21  ;;  %s1816_s20 = smov 127   ;;  %vm963_vm10 = vcmp.lt.s32.totalorder %v1945_v36, 127  ;;  %vm1070_vm11 = vcmp.lt.s32.totalorder %v1945_v36, 113  ;;  %vm1177_vm12 = vcmp.lt.s32.totalorder %v1945_v36, 112 }
  0x1a   : > { %v371_v2 = vld [vmem:[%s359_s14] sm:$0xf]  ;;  %364 = vrot.lane.b32.xlu0 %v362_v1, %s1811_s17  ;;  %s1817_s21 = smov 113   ;;  %vm1281_vm13 = vcmp.lt.s32.totalorder %v1945_v36, 111  ;;  %s1601_s10 = sshll.u32 %s333_s23, 4 }
  0x1b   : > { %373 = vst.msk [vmem:[#allocation2 + $0x8] sm:$0xf] %vm372_vm1, %v371_v2  ;;  %v369_v3 = vld [vmem:[%s343_s8] sm:$0xf]  ;;  %s1813_s8 = smov 17   ;;  %s335_s11 = scalar_lea.vmem [#allocation4], %s1601_s10 }
  0x1c   : > { %375 = vst.msk [vmem:[#allocation2 + $0x8] sm:$0xf] %vm374_vm2, %v1810_v0  ;;  %s1680_s13 = sshll.u32 (%p1907_p5), %s1796_s27, 2 }
  0x1d   : > { %370 = vst [vmem:[#allocation2 + $0x4] sm:$0xf] %v369_v3  ;;  %s1450_s14 = sadd.s32 (%p1907_p5), %s1792_s26, %s1680_s13 }
  0x1e   : > { %s1681_s15 = sshll.u32 (%p1907_p5), %s1450_s14, 3 }
  0x23   : > { %v377_v4 = vld [vmem:[#allocation2 + $0x8] sm:$0xf] }
  0x24   : > { %440 = vst [vmem:[#allocation1 + $0x10] ss:$2 sm:$0xff] %v377_v4 }
  0x2b   : > { %v443_v5 = vld.sshfl [vmem:[#allocation1 + $0x10] sm:$0xff pattern:$0x75316420] }
  0x2c   : > { %544 = vst [vmem:[#allocation1 + $0x10] ss:$2 sm:$0xff] %v377_v4 }
  0x33   : > { %v547_v6 = vld.sshfl [vmem:[#allocation1 + $0x10] sm:$0xff pattern:$0x75316420] }
  0x34   : > { %555 = vrot.lane.b32.xlu2 %v547_v6, %s1812_s18  ;;  %648 = vst [vmem:[#allocation1 + $0x10] ss:$2 sm:$0xff] %v377_v4  ;;  %v1819_v6 = vmov 0  }
  0x35   : > { %1751 = vset.pattern.permute.xlu1 %v1819_v6  ;;  %1753 = vset.pattern.permute.xlu0 %v1819_v6 }
  0x36   : > { %1752 = vset.pattern.permute.xlu2 %v1819_v6 }
  0x3b   : > { %v651_v7 = vld.sshfl [vmem:[#allocation1 + $0x10] sm:$0xff pattern:$0x75316420] }
  0x3c   : > { %755 = vst [vmem:[#allocation1 + $0x10] ss:$2 sm:$0xff] %v377_v4 }
  0x43   : > { %v758_v9 = vld.sshfl [vmem:[#allocation1 + $0x10] sm:$0xff pattern:$0x75316420] }
  0x44   : > { %864 = vst [vmem:[#allocation1 + $0x10] ss:$2 sm:$0xff] %v377_v4 }
  0x4b   : > { %v1936_v11 = vld.sshfl [vmem:[#allocation1 + $0x10] sm:$0xff pattern:$0x75316420] }
  0x4c   : > { %950 = vst [vmem:[#allocation1 + $0x10] ss:$2 sm:$0xff] %v377_v4 }
  0x53   : > { %v953_v14 = vld.sshfl [vmem:[#allocation1 + $0x10] sm:$0xff pattern:$0x75316420] }
  0x54   : > { %1057 = vst [vmem:[#allocation1 + $0x10] ss:$2 sm:$0xff] %v377_v4 }
  0x5b   : > { %v1060_v23 = vld.sshfl [vmem:[#allocation1 + $0x10] sm:$0xff pattern:$0x75316420] }
  0x5c   : > { %1164 = vst [vmem:[#allocation1 + $0x10] ss:$2 sm:$0xff] %v377_v4 }
  0x63   : > { %v1167_v26 = vld.sshfl [vmem:[#allocation1 + $0x10] sm:$0xff pattern:$0x75316420] }
  0x64   : > { %1268 = vst [vmem:[#allocation1 + $0x10] ss:$2 sm:$0xff] %v377_v4  ;;  %v1641_v4 = vld [vmem:[%s2129_s3 + $0x10] sm:$0xf] }
  0x6b   : > { %v1271_v31 = vld.sshfl [vmem:[#allocation1 + $0x10] sm:$0xff pattern:$0x75316420] }
  0x8c   : > { %v365_v8 = vpop.permute.xlu0 %364 }
  0x8d   : > { %368 = vst.msk [vmem:[#allocation2] sm:$0xf] %vm367_vm3, %v365_v8  ;;  %v1648_v8 = vld [vmem:[%s2129_s3 + $0x14] sm:$0xf] }
  0x8e   : > { %v556_v34 = vpop.permute.xlu2 %555 }
  0x94   : > { %v376_v10 = vld [vmem:[#allocation2] sm:$0xff] }
  0x95   : > { %438 = vst [vmem:[#allocation1] ss:$2 sm:$0xff] %v376_v10 }
  0x9c   : > { %v442_v12 = vld.sshfl [vmem:[#allocation1 + $0x8] sm:$0xff pattern:$0x75316420]  ;;  %v441_v13 = vld.sshfl [vmem:[#allocation1] sm:$0xff pattern:$0x75316420] }
  0x9d   : > { %449 = vrot.lane.b32.xlu1 %v442_v12, %s1813_s8  ;;  %447 = vrot.lane.b32.xlu0 %v441_v13, %s1813_s8  ;;  %542 = vst [vmem:[#allocation1] ss:$2 sm:$0xff] %v376_v10 }
  0xa4   : > { %v546_v15 = vld.sshfl [vmem:[#allocation1 + $0x8] sm:$0xff pattern:$0x75316420]  ;;  %v545_v16 = vld.sshfl [vmem:[#allocation1] sm:$0xff pattern:$0x75316420] }
  0xa5   : > { %451 = vrot.lane.b32.xlu1 %v443_v5, %s1813_s8  ;;  %553 = vrot.lane.b32.xlu0 %v546_v15, %s1812_s18  ;;  %646 = vst [vmem:[#allocation1] ss:$2 sm:$0xff] %v376_v10  ;;  %v1375_v5 = vld [vmem:[%s2130_s4] sm:$0xf] }
  0xa6   : > { %551 = vrot.lane.b32.xlu2 %v545_v16, %s1812_s18  ;;  %s1452_s18 = scalar_lea.vmem (%p1907_p5), %s2133_s7, %s1681_s15 }
  0xac   : > { %v650_v17 = vld.sshfl [vmem:[#allocation1 + $0x8] sm:$0xff pattern:$0x75316420]  ;;  %v649_v18 = vld.sshfl [vmem:[#allocation1] sm:$0xff pattern:$0x75316420] }
  0xad   : > { %659 = vrot.lane.b32.xlu0 %v651_v7, %s1814_s9  ;;  %655 = vrot.lane.b32.xlu1 %v649_v18, %s1814_s9  ;;  %753 = vst [vmem:[#allocation1] ss:$2 sm:$0xff] %v376_v10 }
  0xae   : > { %657 = vrot.lane.b32.xlu2 %v650_v17, %s1814_s9 }
  0xb4   : > { %v757_v19 = vld.sshfl [vmem:[#allocation1 + $0x8] sm:$0xff pattern:$0x75316420]  ;;  %v756_v20 = vld.sshfl [vmem:[#allocation1] sm:$0xff pattern:$0x75316420] }
  0xb5   : > { %766 = vrot.lane.b32.xlu0 %v758_v9, %s1815_s19  ;;  %762 = vrot.lane.b32.xlu1 %v756_v20, %s1815_s19  ;;  %862 = vst [vmem:[#allocation1] ss:$2 sm:$0xff] %v376_v10 }
  0xb6   : > { %764 = vrot.lane.b32.xlu2 %v757_v19, %s1815_s19 }
  0xbc   : > { %v1938_v21 = vld.sshfl [vmem:[#allocation1] sm:$0xff pattern:$0x75316420]  ;;  %v1940_v22 = vld.sshfl [vmem:[#allocation1 + $0x8] sm:$0xff pattern:$0x75316420] }
  0xbd   : > { %948 = vst [vmem:[#allocation1] ss:$2 sm:$0xff] %v376_v10  ;;  %961 = vrot.lane.b32.xlu0 %v953_v14, %s1816_s20  ;;  %v1655_v14 = vld [vmem:[%s2129_s3 + $0x18] sm:$0xf] }
  0xc4   : > { %v952_v24 = vld.sshfl [vmem:[#allocation1 + $0x8] sm:$0xff pattern:$0x75316420]  ;;  %v951_v25 = vld.sshfl [vmem:[#allocation1] sm:$0xff pattern:$0x75316420] }
  0xc5   : > { %959 = vrot.lane.b32.xlu2 %v952_v24, %s1816_s20  ;;  %957 = vrot.lane.b32.xlu1 %v951_v25, %s1816_s20  ;;  %1055 = vst [vmem:[#allocation1] ss:$2 sm:$0xff] %v376_v10 }
  0xcc   : > { %v1059_v27 = vld.sshfl [vmem:[#allocation1 + $0x8] sm:$0xff pattern:$0x75316420]  ;;  %v1058_v28 = vld.sshfl [vmem:[#allocation1] sm:$0xff pattern:$0x75316420] }
  0xcd   : > { %1066 = vrot.lane.b32.xlu1 %v1059_v27, %s1817_s21  ;;  %1064 = vrot.lane.b32.xlu0 %v1058_v28, %s1817_s21  ;;  %1162 = vst [vmem:[#allocation1] ss:$2 sm:$0xff] %v376_v10  ;;  %v1669_v28 = vld [vmem:[%s2129_s3 + $0x20] sm:$0xf] }
  0xce   : > { %1068 = vrot.lane.b32.xlu2 %v1060_v23, %s1817_s21 }
  0xd4   : > { %v1166_v29 = vld.sshfl [vmem:[#allocation1 + $0x8] sm:$0xff pattern:$0x75316420]  ;;  %v1165_v30 = vld.sshfl [vmem:[#allocation1] sm:$0xff pattern:$0x75316420] }
  0xd5   : > { %1173 = vrot.lane.b32.xlu1 %v1166_v29, %s1811_s17  ;;  %1171 = vrot.lane.b32.xlu0 %v1165_v30, %s1811_s17  ;;  %1266 = vst [vmem:[#allocation1] ss:$2 sm:$0xff] %v376_v10 }
  0xd6   : > { %1175 = vrot.lane.b32.xlu2 %v1167_v26, %s1811_s17 }
  0xdc   : > { %v1270_v32 = vld.sshfl [vmem:[#allocation1 + $0x8] sm:$0xff pattern:$0x75316420]  ;;  %v1269_v33 = vld.sshfl [vmem:[#allocation1] sm:$0xff pattern:$0x75316420] }
  0xdd   : > { %1277 = vrot.lane.b32.xlu1 %v1270_v32, %s1818_s22  ;;  %1275 = vrot.lane.b32.xlu0 %v1269_v33, %s1818_s22  ;;  %v381_v32 = vadd.s32 256, %v1945_v36 }
  0xde   : > { %1279 = vrot.lane.b32.xlu2 %v1271_v31, %s1818_s22 }
  0xdf   : > { %v400_v33 = vand.u32 15, %v381_v32 }
  0xe1   : > { %vm420_vm14 = vcmp.ge.s32.totalorder %v400_v33, 1  ;;  %vm429_vm15 = vcmp.le.s32.totalorder %v400_v33, 14 }
  0xe5   : > { %1378 = vperm.xlu1 %1751, %v1375_v5  }
 0x100   : > { %v552_v37 = vpop.permute.xlu2 %551 }
 0x101   : > { %v560_v39 = vsel %vm557_vm4, %v556_v34, %v552_v37 }
 0x102   : > { %1621 = vmatpush.msk.msra.mxu3 %vm462_vm5, %v560_v39 }
 0x103   : > { %1622 = vmatmul.msk.f32.vlgmr.msra.gmra.mxu3 %vm458_vm6, %v1620_v38 }
 0x108   : > { %v658_v50 = vpop.permute.xlu2 %657 }
 0x10f   : > { %v450_v40 = vpop.permute.xlu1 %449  ;;  %v448_v41 = vpop.permute.xlu0 %447 }
 0x110   : > { %v455_v42 = vsel %vm453_vm7, %v448_v41, %v450_v40  ;;  %v765_v57 = vpop.permute.xlu2 %764 }
 0x111   : > { %1616 = vmatpush.msk.msra.mxu1 %vm462_vm5, %v455_v42 }
 0x112   : > { %1617 = vmatmul.msk.f32.vlgmr.msra.gmra.mxu1 %vm458_vm6, %v457_v43 }
 0x117   : > { %v452_v44 = vpop.permute.xlu1 %451  ;;  %v554_v45 = vpop.permute.xlu0 %553 }
 0x118   : > { %v456_v46 = vsel %vm453_vm7, %v452_v44, %v448_v41  ;;  %v454_v47 = vsel %vm453_vm7, %v450_v40, %v452_v44  ;;  %v558_v48 = vsel %vm557_vm4, %v554_v45, %v556_v34  ;;  %v559_v49 = vsel %vm557_vm4, %v552_v37, %v554_v45 }
 0x119   : > { %1614 = vmatpush.msk.msra.mxu0 %vm462_vm5, %v456_v46  ;;  %1618 = vmatpush.msk.msra.mxu2 %vm462_vm5, %v454_v47  ;;  %v2056_v37 = vsel %vm420_vm14, 1.0, %v1810_v0 }
 0x11a   : > { %1625 = vmatpush.msk.msrb.mxu1 %vm462_vm5, %v558_v48  ;;  %1615 = vmatmul.msk.f32.vlgmr.msra.gmra.mxu0 %vm458_vm6, %v457_v43 }
 0x11b   : > { %1619 = vmatmul.msk.f32.vlgmr.msra.gmra.mxu2 %vm458_vm6, %v457_v43  ;;  %1623 = vmatpush.msk.msrb.mxu0 %vm462_vm5, %v559_v49  ;;  %v380_v49 = vadd.s32 128, %v1945_v36 }
 0x11c   : > { %1626 = vmatmul.msk.f32.vlgmr.msrb.gmra.mxu1 %vm458_vm6, %v1620_v38 }
 0x11f   : > { %v660_v51 = vpop.permute.xlu0 %659  ;;  %v656_v52 = vpop.permute.xlu1 %655 }
 0x120   : > { %v662_v54 = vsel %vm661_vm8, %v658_v50, %v660_v51  ;;  %v664_v55 = vsel %vm661_vm8, %v660_v51, %v656_v52  ;;  %v663_v56 = vsel %vm661_vm8, %v656_v52, %v658_v50  ;;  %v960_v1 = vpop.permute.xlu2 %959  ;;  %v2061_v50 = vsel %vm429_vm15, 1.0, %v1810_v0 }
 0x121   : > { %1628 = vmatpush.msk.msrb.mxu2 %vm462_vm5, %v664_v55  ;;  %1630 = vmatpush.msk.msrb.mxu3 %vm462_vm5, %v663_v56  ;;  %v393_v52 = vand.u32 15, %v380_v49  ;;  %v386_v56 = vand.u32 15, %v1945_v36 }
 0x122   : > { %1632 = vmatpush.msk.msra.mxu0 %vm462_vm5, %v662_v54  ;;  %1631 = vmatmul.msk.f32.vlgmr.msrb.gmra.mxu3 %vm458_vm6, %v1627_v53 }
 0x123   : > { %1624 = vmatmul.msk.f32.vlgmr.msrb.gmra.mxu0 %vm458_vm6, %v1620_v38  ;;  %1629 = vmatmul.msk.f32.vlgmr.msrb.gmra.mxu2 %vm458_vm6, %v1627_v53  ;;  %vm419_vm0 = vcmp.ge.s32.totalorder %v393_v52, 1  ;;  %vm428_vm1 = vcmp.le.s32.totalorder %v393_v52, 14  ;;  %vm418_vm2 = vcmp.ge.s32.totalorder %v386_v56, 1  ;;  %vm427_vm3 = vcmp.le.s32.totalorder %v386_v56, 14 }
 0x124   : > { %1642 = vmatpush.msk.msrb.mxu0 %vm462_vm5, %v1938_v21  ;;  %v1662_v21 = vld [vmem:[%s2129_s3 + $0x1c] sm:$0xf]  ;;  %v1611_v36 = vsel %vm427_vm3, 1.0, %v1810_v0 }
 0x127   : > { %v767_v58 = vpop.permute.xlu0 %766  ;;  %v763_v59 = vpop.permute.xlu1 %762 }
 0x128   : > { %v769_v60 = vsel %vm768_vm9, %v765_v57, %v767_v58  ;;  %v770_v61 = vsel %vm768_vm9, %v763_v59, %v765_v57  ;;  %v771_v62 = vsel %vm768_vm9, %v767_v58, %v763_v59 }
 0x129   : > { %1635 = vmatpush.msk.msra.mxu1 %vm462_vm5, %v771_v62  ;;  %1637 = vmatpush.msk.msra.mxu2 %vm462_vm5, %v770_v61  ;;  %v1612_v61 = vsel %vm428_vm1, 1.0, %v1810_v0 }
 0x12a   : > { %1639 = vmatpush.msk.msra.mxu3 %vm462_vm5, %v769_v60  ;;  %1636 = vmatmul.msk.f32.vlgmr.msra.gmra.mxu1 %vm458_vm6, %v1634_v63  ;;  %v1609_v60 = vsel %vm419_vm0, 1.0, %v1810_v0 }
 0x12b   : > { %1644 = vmatpush.msk.msrb.mxu1 %vm462_vm5, %v1940_v22  ;;  %1638 = vmatmul.msk.f32.vlgmr.msra.gmra.mxu2 %vm458_vm6, %v1634_v63 }
 0x12c   : > { %1633 = vmatmul.msk.f32.vlgmr.msra.gmra.mxu0 %vm458_vm6, %v1627_v53  ;;  %1640 = vmatmul.msk.f32.vlgmr.msra.gmra.mxu3 %vm458_vm6, %v1634_v63 }
 0x12d   : > { %1646 = vmatpush.msk.msrb.mxu2 %vm462_vm5, %v1936_v11  ;;  %v1069_v11 = vpop.permute.xlu2 %1068 }
 0x12f   : > { %v962_v2 = vpop.permute.xlu0 %961 }
 0x130   : > { %v964_v3 = vsel %vm963_vm10, %v960_v1, %v962_v2 }
 0x131   : > { %1651 = vmatpush.msk.msra.mxu0 %vm462_vm5, %v964_v3 }
 0x132   : > { %1645 = vmatmul.msk.f32.vlgmr.msrb.gmra.mxu1 %vm458_vm6, %v1641_v4 }
 0x133   : > { %1647 = vmatmul.msk.f32.vlgmr.msrb.gmra.mxu2 %vm458_vm6, %v1641_v4 }
 0x134   : > { %1643 = vmatmul.msk.f32.vlgmr.msrb.gmra.mxu0 %vm458_vm6, %v1641_v4 }
 0x135   : > { %v1176_v18 = vpop.permute.xlu2 %1175 }
 0x137   : > { %v958_v7 = vpop.permute.xlu1 %957 }
 0x138   : > { %v965_v9 = vsel %vm963_vm10, %v958_v7, %v960_v1  ;;  %v966_v10 = vsel %vm963_vm10, %v962_v2, %v958_v7  ;;  %v1608_v1 = vsel %vm418_vm2, 1.0, %v1810_v0 }
 0x139   : > { %1649 = vmatpush.msk.msrb.mxu3 %vm462_vm5, %v965_v9  ;;  %1653 = vmatpush.msk.msra.mxu1 %vm462_vm5, %v966_v10 }
 0x13a   : > { %1650 = vmatmul.msk.f32.vlgmr.msrb.gmra.mxu3 %vm458_vm6, %v1648_v8  ;;  %1654 = vmatmul.msk.f32.vlgmr.msra.gmra.mxu1 %vm458_vm6, %v1648_v8 }
 0x13c   : > { %1652 = vmatmul.msk.f32.vlgmr.msra.gmra.mxu0 %vm458_vm6, %v1648_v8 }
 0x13d   : > { %v1280_v25 = vpop.permute.xlu2 %1279 }
 0x13f   : > { %v1067_v12 = vpop.permute.xlu1 %1066  ;;  %v1065_v13 = vpop.permute.xlu0 %1064 }
 0x140   : > { %v1071_v15 = vsel %vm1070_vm11, %v1067_v12, %v1069_v11  ;;  %v1072_v16 = vsel %vm1070_vm11, %v1065_v13, %v1067_v12  ;;  %v1073_v17 = vsel %vm1070_vm11, %v1069_v11, %v1065_v13 }
 0x141   : > { %1656 = vmatpush.msk.msra.mxu2 %vm462_vm5, %v1072_v16  ;;  %1658 = vmatpush.msk.msra.mxu3 %vm462_vm5, %v1071_v15 }
 0x142   : > { %1660 = vmatpush.msk.msrb.mxu0 %vm462_vm5, %v1073_v17  ;;  %1659 = vmatmul.msk.f32.vlgmr.msra.gmra.mxu3 %vm458_vm6, %v1655_v14 }
 0x143   : > { %1657 = vmatmul.msk.f32.vlgmr.msra.gmra.mxu2 %vm458_vm6, %v1655_v14 }
 0x144   : > { %1661 = vmatmul.msk.f32.vlgmr.msrb.gmra.mxu0 %vm458_vm6, %v1655_v14 }
 0x147   : > { %v1174_v19 = vpop.permute.xlu1 %1173  ;;  %v1172_v20 = vpop.permute.xlu0 %1171 }
 0x148   : > { %v1178_v22 = vsel %vm1177_vm12, %v1174_v19, %v1176_v18  ;;  %v1179_v23 = vsel %vm1177_vm12, %v1172_v20, %v1174_v19  ;;  %v1180_v24 = vsel %vm1177_vm12, %v1176_v18, %v1172_v20 }
 0x149   : > { %1663 = vmatpush.msk.msrb.mxu1 %vm462_vm5, %v1179_v23  ;;  %1665 = vmatpush.msk.msrb.mxu2 %vm462_vm5, %v1178_v22 }
 0x14a   : > { %1667 = vmatpush.msk.msrb.mxu3 %vm462_vm5, %v1180_v24  ;;  %1664 = vmatmul.msk.f32.vlgmr.msrb.gmra.mxu1 %vm458_vm6, %v1662_v21 }
 0x14b   : > { %1666 = vmatmul.msk.f32.vlgmr.msrb.gmra.mxu2 %vm458_vm6, %v1662_v21  ;;  %1668 = vmatmul.msk.f32.vlgmr.msrb.gmra.mxu3 %vm458_vm6, %v1662_v21 }
 0x14f   : > { %v1278_v26 = vpop.permute.xlu1 %1277  ;;  %v1276_v27 = vpop.permute.xlu0 %1275 }
 0x150   : > { %v1282_v29 = vsel %vm1281_vm13, %v1278_v26, %v1280_v25  ;;  %v1283_v30 = vsel %vm1281_vm13, %v1276_v27, %v1278_v26  ;;  %v1284_v31 = vsel %vm1281_vm13, %v1280_v25, %v1276_v27 }
 0x151   : > { %1670 = vmatpush.msk.msra.mxu0 %vm462_vm5, %v1283_v30  ;;  %1672 = vmatpush.msk.msra.mxu1 %vm462_vm5, %v1282_v29 }
 0x152   : > { %1674 = vmatpush.msk.msra.mxu2 %vm462_vm5, %v1284_v31  ;;  %1673 = vmatmul.msk.f32.vlgmr.msra.gmra.mxu1 %vm458_vm6, %v1669_v28 }
 0x153   : > { %1671 = vmatmul.msk.f32.vlgmr.msra.gmra.mxu0 %vm458_vm6, %v1669_v28  ;;  %1675 = vmatmul.msk.f32.vlgmr.msra.gmra.mxu2 %vm458_vm6, %v1669_v28 }
 0x186   : > { %v592_v40 = vpop.f32.mrf.mxu3 }
 0x18f   : > { %v509_v34 = vpop.f32.mrf.mxu1 }
 0x190   : > { %v533_v63 = vmul.f32 %v1609_v60, %v509_v34 }
 0x192   : > { %v537_v8 = vrot.slane %v533_v63, 4 }
 0x197   : > { %v489_v35 = vpop.f32.mrf.mxu0 }
 0x198   : > { %v532_v9 = vmul.f32 %v1608_v1, %v489_v35 }
 0x199   : > { %v632_v41 = vpop.f32.mrf.mxu1 }
 0x19a   : > { %v538_v15 = vsel %vm462_vm5, %v532_v9, %v537_v8 }
 0x19e   : > { %v529_v38 = vpop.f32.mrf.mxu2 }
 0x19f   : > { %v534_v39 = vmul.f32 %v2056_v37, %v529_v38 }
 0x1a0   : > { %v612_v42 = vpop.f32.mrf.mxu0 }
 0x1a1   : > { %541 = vst [vmem:[#allocation3 + $0x8] sm:$0xf] %v534_v39  ;;  %v639_v10 = vrot.slane %v612_v42, 4  ;;  %v1820_v39 = vmov 839922192  }
 0x1a3   : > { %v640_v16 = vsel %vm462_vm5, %v592_v40, %v639_v10  ;;  %v1381_v40 = vunpack.c.l.s4 %v1820_v39 }
 0x1a4   : > { %v642_v20 = vadd.f32 %v640_v16, %v538_v15 }
 0x1a5   : > { %v716_v47 = vpop.f32.mrf.mxu3  ;;  %v1382_v49 = vunpack.c.0.s8 %v1381_v40 }
 0x1a6   : > { %v696_v45 = vpop.f32.mrf.mxu2  ;;  %v740_v2 = vmul.f32 %v1612_v61, %v716_v47 }
 0x1a7   : > { %v803_v48 = vpop.f32.mrf.mxu1  ;;  %v739_v14 = vmul.f32 %v1611_v36, %v696_v45 }
 0x1a8   : > { %v636_v43 = vld [vmem:[#allocation3 + $0x8] sm:$0xf]  ;;  %v746_v13 = vrot.slane %v740_v2, 4  ;;  %v846_v18 = vmul.f32 %v1608_v1, %v803_v48 }
 0x1a9   : > { %v643_v44 = vadd.f32 %v636_v43, %v632_v41  ;;  %v736_v46 = vpop.f32.mrf.mxu0 }
 0x1aa   : > { %v741_v51 = vmul.f32 %v2061_v50, %v736_v46  ;;  %v747_v19 = vsel %vm462_vm5, %v739_v14, %v746_v13 }
 0x1ab   : > { %645 = vst [vmem:[#allocation3 + $0x8] sm:$0xf] %v643_v44  ;;  %v749_v28 = vadd.f32 %v747_v19, %v642_v20 }
 0x1ae   : > { %v823_v57 = vpop.f32.mrf.mxu2 }
 0x1af   : > { %v843_v55 = vpop.f32.mrf.mxu3  ;;  %v914_v59 = vpop.f32.mrf.mxu1  ;;  %v847_v11 = vmul.f32 %v1609_v60, %v823_v57 }
 0x1b0   : > { %v848_v62 = vmul.f32 %v2056_v37, %v843_v55  ;;  %v941_v23 = vrot.slane %v914_v59, 4 }
 0x1b1   : > { %v894_v58 = vpop.f32.mrf.mxu0  ;;  %v853_v17 = vrot.slane %v847_v11, 4 }
 0x1b2   : > { %v743_v53 = vld [vmem:[#allocation3 + $0x8] sm:$0xf]  ;;  %v942_v34 = vsel %vm462_vm5, %v894_v58, %v941_v23 }
 0x1b3   : > { %v750_v54 = vadd.f32 %v743_v53, %v741_v51  ;;  %v854_v22 = vsel %vm462_vm5, %v846_v18, %v853_v17 }
 0x1b4   : > { %v856_v33 = vadd.f32 %v854_v22, %v749_v28 }
 0x1b5   : > { %752 = vst [vmem:[#allocation3 + $0x8] sm:$0xf] %v750_v54  ;;  %v1379_v54 = vpop.permute.xlu1 %1378 }
 0x1b6   : > { %v934_v4 = vpop.f32.mrf.mxu2  ;;  %v944_v42 = vadd.f32 %v942_v34, %v856_v33 }
 0x1b7   : > { %v1038_v7 = vpop.f32.mrf.mxu1 }
 0x1b8   : > { %v1043_v46 = vmul.f32 %v2061_v50, %v1038_v7  ;;  %v1389_v7 = vld [vmem:[%s2131_s5] sm:$0xff] }
 0x1b9   : > { %v1018_v12 = vpop.f32.mrf.mxu0 }
 0x1ba   : > { %v1042_v0 = vmul.f32 %v1612_v61, %v1018_v12  ;;  %v1390_v12 = vld [vmem:[%s2131_s5 + $0x8] sm:$0x7f] }
 0x1bc   : > { %v850_v3 = vld [vmem:[#allocation3 + $0x8] sm:$0xf]  ;;  %v1048_v31 = vrot.slane %v1042_v0, 4 }
 0x1bd   : > { %v857_v5 = vadd.f32 %v850_v3, %v848_v62  ;;  %v998_v6 = vpop.f32.mrf.mxu3  ;;  %v1383_v62 = vperm.slane %v1379_v54, %v1382_v49 }
 0x1be   : > { %v1041_v32 = vmul.f32 %v1611_v36, %v998_v6  ;;  %v1392_v6 = vld [vmem:[%s2132_s6 + $0x8] sm:$0x7f] }
 0x1bf   : > { %859 = vst [vmem:[#allocation3 + $0x8] sm:$0xf] %v857_v5  ;;  %1400 = vperm.xlu0 %1753, %v1392_v6  }
 0x1c0   : > { %v1049_v41 = vsel %vm462_vm5, %v1041_v32, %v1048_v31 }
 0x1c1   : > { %v1145_v27 = vpop.f32.mrf.mxu0  ;;  %v1051_v45 = vadd.f32 %v1049_v41, %v944_v42 }
 0x1c2   : > { %v1150_v3 = vmul.f32 %v2056_v37, %v1145_v27 }
 0x1c5   : > { %v1125_v21 = vpop.f32.mrf.mxu3 }
 0x1c6   : > { %v938_v24 = vld [vmem:[#allocation3 + $0x8] sm:$0xf]  ;;  %v1149_v25 = vmul.f32 %v1609_v60, %v1125_v21  ;;  %v1105_v26 = vpop.f32.mrf.mxu2 }
 0x1c7   : > { %v945_v29 = vadd.f32 %v938_v24, %v934_v4  ;;  %v1212_v30 = vpop.f32.mrf.mxu1  ;;  %v1148_v38 = vmul.f32 %v1608_v1, %v1105_v26 }
 0x1c8   : > { %v1155_v35 = vrot.slane %v1149_v25, 4 }
 0x1c9   : > { %947 = vst [vmem:[#allocation3 + $0x8] sm:$0xf] %v945_v29 }
 0x1ca   : > { %v1156_v43 = vsel %vm462_vm5, %v1148_v38, %v1155_v35 }
 0x1cb   : > { %v1158_v56 = vadd.f32 %v1156_v43, %v1051_v45 }
 0x1ce   : > { %v1232_v44 = vpop.f32.mrf.mxu2  ;;  %v1252_v37 = vpop.f32.mrf.mxu3 }
 0x1cf   : > { %v1259_v47 = vrot.slane %v1232_v44, 4  ;;  %v1336_v48 = vpop.f32.mrf.mxu1 }
 0x1d0   : > { %v1045_v51 = vld [vmem:[#allocation3 + $0x8] sm:$0xf]  ;;  %v1360_v52 = vmul.f32 %v1612_v61, %v1336_v48  ;;  %v1316_v53 = vpop.f32.mrf.mxu0 }
 0x1d1   : > { %v1052_v55 = vadd.f32 %v1045_v51, %v1043_v46  ;;  %v1260_v57 = vsel %vm462_vm5, %v1212_v30, %v1259_v47  ;;  %v1359_v58 = vmul.f32 %v1611_v36, %v1316_v53  ;;  %v1391_v36 = vld [vmem:[%s2132_s6] sm:$0xff] }
 0x1d2   : > { %v1366_v59 = vrot.slane %v1360_v52, 4  ;;  %v1262_v60 = vadd.f32 %v1260_v57, %v1158_v56  ;;  %1395 = vperm.xlu2 %1752, %v1391_v36  }
 0x1d3   : > { %1054 = vst [vmem:[#allocation3 + $0x8] sm:$0xf] %v1052_v55 }
 0x1d4   : > { %v1367_v63 = vsel %vm462_vm5, %v1359_v58, %v1366_v59 }
 0x1d5   : > { %v1369_v1 = vadd.f32 %v1367_v63, %v1262_v60 }
 0x1d6   : > { %v1356_v11 = vpop.f32.mrf.mxu2 }
 0x1d7   : > { %v1385_v2 = vadd.f32 %v1383_v62, %v1369_v1  ;;  %v1361_v13 = vmul.f32 %v2061_v50, %v1356_v11 }
 0x1d9   : > { %v1387_v4 = vmax.f32 %v1385_v2, 0.0 }
 0x1da   : > { %v1152_v5 = vld [vmem:[#allocation3 + $0x8] sm:$0xf] }
 0x1db   : > { %v1159_v61 = vadd.f32 %v1152_v5, %v1150_v3  ;;  %1405 = vst [vmem:[#allocation1] ss:$2 sm:$0xff] %v1387_v4 }
 0x1dd   : > { %1161 = vst [vmem:[#allocation3 + $0x8] sm:$0xf] %v1159_v61 }
 0x1e2   : > { %v1408_v8 = vld.sshfl [vmem:[#allocation1 + $0x8] sm:$0xff pattern:$0x75316420] }
 0x1e3   : > { %1676 = vmatpush.msk.msra.mxu3 %vm462_vm5, %v1408_v8 }
 0x1e4   : > { %v1256_v9 = vld [vmem:[#allocation3 + $0x8] sm:$0xf]  ;;  %1677 = vmatmul.msk.f32.vlgmr.msra.gmra.mxu3 %vm458_vm6, %v1389_v7 }
 0x1e5   : > { %v1263_v10 = vadd.f32 %v1256_v9, %v1252_v37 }
 0x1e7   : > { %1265 = vst [vmem:[#allocation3 + $0x8] sm:$0xf] %v1263_v10 }
 0x1ec   : > { %1678 = vmatmul.msk.f32.gmra.mxu3 %vm458_vm6, %v1390_v12 }
 0x1ee   : > { %v1363_v14 = vld [vmem:[#allocation3 + $0x8] sm:$0xf] }
 0x1ef   : > { %v1370_v15 = vadd.f32 %v1363_v14, %v1361_v13 }
 0x1f1   : > { %1372 = vst [vmem:[#allocation3 + $0x8] sm:$0xf] %v1370_v15 }
 0x1f8   : > { %v1374_v16 = vld [vmem:[#allocation3 + $0x8] sm:$0xf] }
 0x1f9   : > { %v1386_v17 = vadd.f32 %v1383_v62, %v1374_v16 }
 0x1fb   : > { %v1388_v18 = vmax.f32 %v1386_v17, 0.0 }
 0x1fd   : > { %1407 = vst [vmem:[#allocation1 + $0x10] ss:$2 sm:$0xff] %v1388_v18 }
 0x22c   : > { %v1396_v19 = vpop.permute.xlu2 %1395 }
 0x231   : > { %v1401_v21 = vpop.permute.xlu0 %1400 }
 0x267   : > { %v1434_v0 = vpop.f32.mrf.mxu3 }
 0x268   : > { %v1435_v20 = vadd.f32 %v1434_v0, %v1396_v19 }
 0x26a   : > { %1440 = vst [vmem:[%s335_s11] sm:$0xff] %v1435_v20 }
 0x26e   : > { %1448 = sbr.rel (!%p1907_p5) target bundleno = 635 (0x27b), region = 52 }
 0x26f   : > { %v1437_v22 = vpop.f32.mrf.mxu3 }
 0x270   : > { %v1438_v23 = vadd.f32 %v1437_v22, %v1401_v21 }
 0x271   : > { %v1483_v50 = vld [vmem:[%s335_s11] sm:$0xff] (%p1907_p5) }
 0x272   : > { %1441 = vst [vmem:[%s335_s11 + $0x8] sm:$0x7f] %v1438_v23 }
 0x273   : > { %1484 = vst [vmem:[%s1452_s18] sm:$0xff] %v1483_v50 }
 0x279   : > { %v1485_v24 = vld [vmem:[%s335_s11 + $0x8] sm:$0xff] }
 0x27a   : > { %1486 = vst [vmem:[%s1452_s18 + $0x10] sm:$0xff] %v1485_v24 }
 0x27b PF: > { %s17_s30 = sadd.s32 1, %s1808_s30   ;;  %s2139_s12 = sld [smem:[#allocation5_spill]] }
 0x27c   : > { %p14_p11 = scmp.ge.s32.totalorder %s17_s30, 6   ;;  %s2140_s8 = sld [smem:[#allocation6_spill]] }
 0x27d   : > { %s2141_s24 = smov %s1788_s25  ;;  %s2142_s25 = smov %s1918_s16 }
 0x27e   : > { %s2143_s26 = smov %s1800_s28  ;;  %s2144_s27 = smov %s1804_s29 }
 0x27f   :  { %16 = sbr.rel (!%p14_p11) target bundleno = 4 (0x4), region = 140 }
 0x281   : > { %s2145_s28 = smov %s2139_s12 }
 0x282   : > { %s2146_s29 = smov %s2140_s8 }

</bundles_post_ra>
